<compile_context>
chip_gen: v6e
topology: v6e:2x2x1
jax: 0.10.0
libtpu: 0.0.40
codegen_flags: <defaults>
</compile_context>

<pallas_src>
import functools

import numpy as np
import jax
import jax.numpy as jnp
from jax.experimental import pallas as pl
from jax.experimental.pallas import tpu as pltpu

# ---------------------------------------------------------------------------
# Problem sizes (kept small, consistent with the module's forward)
# ---------------------------------------------------------------------------
B = 2              # batch
C_IN = 3           # image channels
H = W = 16         # small image spatial size
C_HID = 8          # conv stand-in channels
RES_OUT = 1000     # resnet18 output dim
NUM_RVS = 15       # num_RVs
COND_DIM = RES_OUT + NUM_RVS   # input_size = 1000 + 15
K_MIX = 4          # mixture components in the CSPN stand-in
KR = K_MIX * NUM_RVS

_LOG_SQRT_2PI = 0.9189385332046727  # 0.5 * log(2*pi)


# ---------------------------------------------------------------------------
# Single fused kernel: conv(im2col matmul)+ReLU -> GAP -> folded-FC CSPN head
# ---------------------------------------------------------------------------
def _fused_net_kernel(patches_ref, conv_w_ref, conv_b_ref, pool_ref,
                      yolo_ref, label_ref,
                      wim_mu_ref, wyo_mu_ref, bmu_ref,
                      wim_ls_ref, wyo_ls_ref, bls_ref,
                      wim_w_ref, wyo_w_ref, bw_ref,
                      tile_ref, sum_ref, o_ref):
    f32 = jnp.float32
    dot = functools.partial(jnp.dot, preferred_element_type=f32)

    # conv3x3 stand-in (im2col matmul) + ReLU; activation stays in VMEM.
    h = jnp.maximum(dot(patches_ref[...], conv_w_ref[...]) + conv_b_ref[...], 0.0)

    # Global average pool fused as a pooling-matrix matmul: [B, BHW] @ [BHW, C].
    pooled = dot(pool_ref[...], h)                                  # [B, C_HID]
    yolo = yolo_ref[...]

    # FC(8->1000) folded into the CSPN projections: contraction K=1015 -> 8+15.
    mu = (dot(pooled, wim_mu_ref[...]) + dot(yolo, wyo_mu_ref[...])
          + bmu_ref[...])                                           # [B, K*R]
    log_sigma = (dot(pooled, wim_ls_ref[...]) + dot(yolo, wyo_ls_ref[...])
                 + bls_ref[...])
    log_sigma = jnp.clip(log_sigma, -7.0, 7.0)
    mix = (dot(pooled, wim_w_ref[...]) + dot(yolo, wyo_w_ref[...])
           + bw_ref[...])                                           # [B, K]

    # Broadcast label across mixture components via a matmul (lane-layout safe).
    x_t = dot(label_ref[...], tile_ref[...])                        # [B, K*R]

    inv_var = jnp.exp(-2.0 * log_sigma)
    log_pdf = -0.5 * (x_t - mu) ** 2 * inv_var - log_sigma - _LOG_SQRT_2PI

    # Product node over RVs per mixture component (sum in log space via matmul).
    comp_ll = dot(log_pdf, sum_ref[...])                            # [B, K]

    # log-softmax of mixture weights + root logsumexp over components.
    m_w = jnp.max(mix, axis=-1, keepdims=True)
    log_w = mix - (m_w + jnp.log(jnp.sum(jnp.exp(mix - m_w), axis=-1,
                                         keepdims=True)))
    total = comp_ll + log_w
    m_t = jnp.max(total, axis=-1, keepdims=True)
    o_ref[...] = m_t + jnp.log(jnp.sum(jnp.exp(total - m_t), axis=-1,
                                       keepdims=True))


def _full_spec(shape):
    nd = len(shape)
    return pl.BlockSpec(shape, lambda i, nd=nd: (0,) * nd)


def fused_net_pallas(patches, yolo, label, fp):
    Bx = yolo.shape[0]
    operands = (
        patches, fp["conv_w"], fp["conv_b"], fp["pool_mat"],
        yolo, label,
        fp["wim_mu"], fp["wyo_mu"], fp["b_mu"],
        fp["wim_ls"], fp["wyo_ls"], fp["b_ls"],
        fp["wim_w"], fp["wyo_w"], fp["b_w"],
        fp["tile_mat"], fp["sum_mat"],
    )
    return pl.pallas_call(
        _fused_net_kernel,
        out_shape=jax.ShapeDtypeStruct((Bx, 1), jnp.float32),
        grid=(1,),
        in_specs=[_full_spec(op.shape) for op in operands],
        out_specs=_full_spec((Bx, 1)),
        compiler_params=pltpu.CompilerParams(
            dimension_semantics=("arbitrary",)),
    )(*operands)


# ---------------------------------------------------------------------------
# Glue (plain JAX): layout transpose + im2col patch extraction only
# ---------------------------------------------------------------------------
def _im2col_3x3_same(x_nhwc):
    Bx, Hx, Wx, Cx = x_nhwc.shape
    xp = jnp.pad(x_nhwc, ((0, 0), (1, 1), (1, 1), (0, 0)))
    patches = [xp[:, i:i + Hx, j:j + Wx, :] for i in range(3) for j in range(3)]
    return jnp.concatenate(patches, axis=-1).reshape(Bx * Hx * Wx, 9 * Cx)


def net_forward(folded_params, image, yolo_outputs, label):
    # NCHW (PyTorch) -> NHWC so channels sit on the lane axis.
    x = jnp.transpose(image, (0, 2, 3, 1)).astype(jnp.float32)
    patches = _im2col_3x3_same(x)                                   # [B*H*W, 27]
    return fused_net_pallas(patches,
                            yolo_outputs.astype(jnp.float32),
                            label.astype(jnp.float32),
                            folded_params)


# ---------------------------------------------------------------------------
# Deterministic parameter init + one-time algebraic folding
# ---------------------------------------------------------------------------
def init_params():
    keys = jax.random.split(jax.random.PRNGKey(42), 8)
    params = {
        "conv_w": 0.1 * jax.random.normal(keys[0], (9 * C_IN, C_HID), jnp.float32),
        "conv_b": jnp.zeros((C_HID,), jnp.float32),
        "fc_w": 0.05 * jax.random.normal(keys[1], (C_HID, RES_OUT), jnp.float32),
        "fc_b": jnp.zeros((RES_OUT,), jnp.float32),
        "cspn_wm": 0.02 * jax.random.normal(keys[2], (COND_DIM, KR), jnp.float32),
        "cspn_bm": jnp.zeros((KR,), jnp.float32),
        "cspn_ws": 0.02 * jax.random.normal(keys[3], (COND_DIM, KR), jnp.float32),
        "cspn_bs": jnp.zeros((KR,), jnp.float32),
        "cspn_ww": 0.02 * jax.random.normal(keys[4], (COND_DIM, K_MIX), jnp.float32),
        "cspn_bw": jnp.zeros((K_MIX,), jnp.float32),
    }
    # Constant tiling / summation matrices (column ordering: index = k*R + r)
    T = np.zeros((NUM_RVS, KR), np.float32)
    S = np.zeros((KR, K_MIX), np.float32)
    for k in range(K_MIX):
        for r in range(NUM_RVS):
            T[r, k * NUM_RVS + r] = 1.0
            S[k * NUM_RVS + r, k] = 1.0
    params["tile_mat"] = jnp.asarray(T)
    params["sum_mat"] = jnp.asarray(S)
    return params


def fold_params(p, batch):
    """Fold the linear FC(8->1000) into the CSPN projections (done once,
    outside the jitted forward)."""
    hi = jax.lax.Precision.HIGHEST

    def fold(w, b):
        w_img = jnp.dot(p["fc_w"], w[:RES_OUT], precision=hi)        # [C_HID, N]
        b_eff = jnp.dot(p["fc_b"], w[:RES_OUT], precision=hi) + b    # [N]
        return w_img, w[RES_OUT:], b_eff.reshape(1, -1)

    wim_mu, wyo_mu, b_mu = fold(p["cspn_wm"], p["cspn_bm"])
    wim_ls, wyo_ls, b_ls = fold(p["cspn_ws"], p["cspn_bs"])
    wim_w, wyo_w, b_w = fold(p["cspn_ww"], p["cspn_bw"])

    # Block-diagonal averaging matrix: pooled = pool_mat @ relu(conv(...)).
    pool = np.kron(np.eye(batch, dtype=np.float32),
                   np.full((1, H * W), 1.0 / (H * W), np.float32))   # [B, B*H*W]

    return {
        "conv_w": p["conv_w"],
        "conv_b": p["conv_b"].reshape(1, C_HID),
        "pool_mat": jnp.asarray(pool),
        "wim_mu": wim_mu, "wyo_mu": wyo_mu, "b_mu": b_mu,
        "wim_ls": wim_ls, "wyo_ls": wyo_ls, "b_ls": b_ls,
        "wim_w": wim_w, "wyo_w": wyo_w, "b_w": b_w,
        "tile_mat": p["tile_mat"], "sum_mat": p["sum_mat"],
    }


# ---------------------------------------------------------------------------
# Unfused / unfolded pure-JAX reference (semantics check for the fold)
# ---------------------------------------------------------------------------
def reference_forward(p, image, yolo_outputs, label):
    x = jnp.transpose(image, (0, 2, 3, 1)).astype(jnp.float32)
    patches = _im2col_3x3_same(x)
    h = jax.nn.relu(patches @ p["conv_w"] + p["conv_b"])
    pooled = h.reshape(B, H * W, C_HID).mean(axis=1)
    res_output = pooled @ p["fc_w"] + p["fc_b"]
    cond = jnp.concatenate([res_output, yolo_outputs.astype(jnp.float32)], axis=1)
    mu = cond @ p["cspn_wm"] + p["cspn_bm"]
    log_sigma = jnp.clip(cond @ p["cspn_ws"] + p["cspn_bs"], -7.0, 7.0)
    mix = cond @ p["cspn_ww"] + p["cspn_bw"]
    x_t = label.astype(jnp.float32) @ p["tile_mat"]
    log_pdf = (-0.5 * (x_t - mu) ** 2 * jnp.exp(-2.0 * log_sigma)
               - log_sigma - _LOG_SQRT_2PI)
    comp_ll = log_pdf @ p["sum_mat"]
    log_w = jax.nn.log_softmax(mix, axis=-1)
    return jax.scipy.special.logsumexp(comp_ll + log_w, axis=-1, keepdims=True)


# ---------------------------------------------------------------------------
if __name__ == "__main__":
    raw_params = init_params()
    folded_params = fold_params(raw_params, B)

    key = jax.random.PRNGKey(0)
    k_img, k_yolo, k_lbl = jax.random.split(key, 3)
    image = jax.random.normal(k_img, (B, C_IN, H, W), jnp.float32)       # NCHW
    yolo_outputs = jax.random.normal(k_yolo, (B, NUM_RVS), jnp.float32)
    label = jax.random.normal(k_lbl, (B, NUM_RVS), jnp.float32)

    log_prob = jax.jit(net_forward)(folded_params, image, yolo_outputs, label)
    log_prob = jax.block_until_ready(log_prob)
    assert log_prob.shape == (B, 1)
    assert bool(jnp.all(jnp.isfinite(log_prob)))

    # Verify the fused/folded kernel matches the original (unfolded) math.
    ref = jax.jit(reference_forward)(raw_params, image, yolo_outputs, label)
    ref = jax.block_until_ready(ref)
    np.testing.assert_allclose(np.asarray(log_prob), np.asarray(ref),
                               rtol=5e-3, atol=5e-3)

    print("KERNEL_OK")
</pallas_src>

<mosaic_0001>
module attributes {stable_mosaic.version = 11 : i64} {
  func.func @_fused_net_kernel(%arg0: i32, %arg1: memref<512x27xf32, #tpu.memory_space<vmem>>, %arg2: memref<27x8xf32, #tpu.memory_space<vmem>>, %arg3: memref<1x8xf32, #tpu.memory_space<vmem>>, %arg4: memref<2x512xf32, #tpu.memory_space<vmem>>, %arg5: memref<2x15xf32, #tpu.memory_space<vmem>>, %arg6: memref<2x15xf32, #tpu.memory_space<vmem>>, %arg7: memref<8x60xf32, #tpu.memory_space<vmem>>, %arg8: memref<15x60xf32, #tpu.memory_space<vmem>>, %arg9: memref<1x60xf32, #tpu.memory_space<vmem>>, %arg10: memref<8x60xf32, #tpu.memory_space<vmem>>, %arg11: memref<15x60xf32, #tpu.memory_space<vmem>>, %arg12: memref<1x60xf32, #tpu.memory_space<vmem>>, %arg13: memref<8x4xf32, #tpu.memory_space<vmem>>, %arg14: memref<15x4xf32, #tpu.memory_space<vmem>>, %arg15: memref<1x4xf32, #tpu.memory_space<vmem>>, %arg16: memref<15x60xf32, #tpu.memory_space<vmem>>, %arg17: memref<60x4xf32, #tpu.memory_space<vmem>>, %arg18: memref<2x1xf32, #tpu.memory_space<vmem>>) attributes {dimension_semantics = [#tpu.dimension_semantics<arbitrary>], iteration_bounds = array<i64: 1>, scalar_prefetch = 0 : i64, scratch_operands = 0 : i64, tpu.core_type = #tpu.core_type<tc>, window_params = [{pipeline_mode = #tpu.pipeline_mode<synchronous>, transform_indices = @transform_0, window_bounds = array<i64: 512, 27>}, {pipeline_mode = #tpu.pipeline_mode<synchronous>, transform_indices = @transform_1, window_bounds = array<i64: 27, 8>}, {pipeline_mode = #tpu.pipeline_mode<synchronous>, transform_indices = @transform_2, window_bounds = array<i64: 1, 8>}, {pipeline_mode = #tpu.pipeline_mode<synchronous>, transform_indices = @transform_3, window_bounds = array<i64: 2, 512>}, {pipeline_mode = #tpu.pipeline_mode<synchronous>, transform_indices = @transform_4, window_bounds = array<i64: 2, 15>}, {pipeline_mode = #tpu.pipeline_mode<synchronous>, transform_indices = @transform_5, window_bounds = array<i64: 2, 15>}, {pipeline_mode = #tpu.pipeline_mode<synchronous>, transform_indices = @transform_6, window_bounds = array<i64: 8, 60>}, {pipeline_mode = #tpu.pipeline_mode<synchronous>, transform_indices = @transform_7, window_bounds = array<i64: 15, 60>}, {pipeline_mode = #tpu.pipeline_mode<synchronous>, transform_indices = @transform_8, window_bounds = array<i64: 1, 60>}, {pipeline_mode = #tpu.pipeline_mode<synchronous>, transform_indices = @transform_9, window_bounds = array<i64: 8, 60>}, {pipeline_mode = #tpu.pipeline_mode<synchronous>, transform_indices = @transform_10, window_bounds = array<i64: 15, 60>}, {pipeline_mode = #tpu.pipeline_mode<synchronous>, transform_indices = @transform_11, window_bounds = array<i64: 1, 60>}, {pipeline_mode = #tpu.pipeline_mode<synchronous>, transform_indices = @transform_12, window_bounds = array<i64: 8, 4>}, {pipeline_mode = #tpu.pipeline_mode<synchronous>, transform_indices = @transform_13, window_bounds = array<i64: 15, 4>}, {pipeline_mode = #tpu.pipeline_mode<synchronous>, transform_indices = @transform_14, window_bounds = array<i64: 1, 4>}, {pipeline_mode = #tpu.pipeline_mode<synchronous>, transform_indices = @transform_15, window_bounds = array<i64: 15, 60>}, {pipeline_mode = #tpu.pipeline_mode<synchronous>, transform_indices = @transform_16, window_bounds = array<i64: 60, 4>}, {pipeline_mode = #tpu.pipeline_mode<synchronous>, transform_indices = @transform_17, window_bounds = array<i64: 2, 1>}]} {
    %c0 = arith.constant 0 : index
    %c0_0 = arith.constant 0 : index
    %0 = vector.load %arg1[%c0, %c0_0] : memref<512x27xf32, #tpu.memory_space<vmem>>, vector<512x27xf32>
    %c0_1 = arith.constant 0 : index
    %c0_2 = arith.constant 0 : index
    %1 = vector.load %arg2[%c0_1, %c0_2] : memref<27x8xf32, #tpu.memory_space<vmem>>, vector<27x8xf32>
    %cst = arith.constant dense<0.000000e+00> : vector<512x8xf32>
    %2 = tpu.matmul %0, %1, %cst {dimension_numbers = #tpu.dot_dimension_numbers<[1], [0], [0], [1], [0, 0, 1, 1], [], []>} : vector<512x27xf32>, vector<27x8xf32>, vector<512x8xf32> -> vector<512x8xf32>
    %c0_3 = arith.constant 0 : index
    %c0_4 = arith.constant 0 : index
    %3 = vector.load %arg3[%c0_3, %c0_4] : memref<1x8xf32, #tpu.memory_space<vmem>>, vector<1x8xf32>
    %4 = vector.broadcast %3 : vector<1x8xf32> to vector<512x8xf32>
    %5 = arith.addf %2, %4 : vector<512x8xf32>
    %cst_5 = arith.constant 0.000000e+00 : f32
    %6 = vector.broadcast %cst_5 : f32 to vector<512x8xf32>
    %7 = arith.maximumf %5, %6 : vector<512x8xf32>
    %c0_6 = arith.constant 0 : index
    %c0_7 = arith.constant 0 : index
    %8 = vector.load %arg4[%c0_6, %c0_7] : memref<2x512xf32, #tpu.memory_space<vmem>>, vector<2x512xf32>
    %cst_8 = arith.constant dense<0.000000e+00> : vector<2x8xf32>
    %9 = tpu.matmul %8, %7, %cst_8 {dimension_numbers = #tpu.dot_dimension_numbers<[1], [0], [0], [1], [0, 0, 1, 1], [], []>} : vector<2x512xf32>, vector<512x8xf32>, vector<2x8xf32> -> vector<2x8xf32>
    %c0_9 = arith.constant 0 : index
    %c0_10 = arith.constant 0 : index
    %10 = vector.load %arg5[%c0_9, %c0_10] : memref<2x15xf32, #tpu.memory_space<vmem>>, vector<2x15xf32>
    %c0_11 = arith.constant 0 : index
    %c0_12 = arith.constant 0 : index
    %11 = vector.load %arg7[%c0_11, %c0_12] : memref<8x60xf32, #tpu.memory_space<vmem>>, vector<8x60xf32>
    %cst_13 = arith.constant dense<0.000000e+00> : vector<2x60xf32>
    %12 = tpu.matmul %9, %11, %cst_13 {dimension_numbers = #tpu.dot_dimension_numbers<[1], [0], [0], [1], [0, 0, 1, 1], [], []>} : vector<2x8xf32>, vector<8x60xf32>, vector<2x60xf32> -> vector<2x60xf32>
    %c0_14 = arith.constant 0 : index
    %c0_15 = arith.constant 0 : index
    %13 = vector.load %arg8[%c0_14, %c0_15] : memref<15x60xf32, #tpu.memory_space<vmem>>, vector<15x60xf32>
    %cst_16 = arith.constant dense<0.000000e+00> : vector<2x60xf32>
    %14 = tpu.matmul %10, %13, %cst_16 {dimension_numbers = #tpu.dot_dimension_numbers<[1], [0], [0], [1], [0, 0, 1, 1], [], []>} : vector<2x15xf32>, vector<15x60xf32>, vector<2x60xf32> -> vector<2x60xf32>
    %15 = arith.addf %12, %14 : vector<2x60xf32>
    %c0_17 = arith.constant 0 : index
    %c0_18 = arith.constant 0 : index
    %16 = vector.load %arg9[%c0_17, %c0_18] : memref<1x60xf32, #tpu.memory_space<vmem>>, vector<1x60xf32>
    %17 = vector.broadcast %16 : vector<1x60xf32> to vector<2x60xf32>
    %18 = arith.addf %15, %17 : vector<2x60xf32>
    %c0_19 = arith.constant 0 : index
    %c0_20 = arith.constant 0 : index
    %19 = vector.load %arg10[%c0_19, %c0_20] : memref<8x60xf32, #tpu.memory_space<vmem>>, vector<8x60xf32>
    %cst_21 = arith.constant dense<0.000000e+00> : vector<2x60xf32>
    %20 = tpu.matmul %9, %19, %cst_21 {dimension_numbers = #tpu.dot_dimension_numbers<[1], [0], [0], [1], [0, 0, 1, 1], [], []>} : vector<2x8xf32>, vector<8x60xf32>, vector<2x60xf32> -> vector<2x60xf32>
    %c0_22 = arith.constant 0 : index
    %c0_23 = arith.constant 0 : index
    %21 = vector.load %arg11[%c0_22, %c0_23] : memref<15x60xf32, #tpu.memory_space<vmem>>, vector<15x60xf32>
    %cst_24 = arith.constant dense<0.000000e+00> : vector<2x60xf32>
    %22 = tpu.matmul %10, %21, %cst_24 {dimension_numbers = #tpu.dot_dimension_numbers<[1], [0], [0], [1], [0, 0, 1, 1], [], []>} : vector<2x15xf32>, vector<15x60xf32>, vector<2x60xf32> -> vector<2x60xf32>
    %23 = arith.addf %20, %22 : vector<2x60xf32>
    %c0_25 = arith.constant 0 : index
    %c0_26 = arith.constant 0 : index
    %24 = vector.load %arg12[%c0_25, %c0_26] : memref<1x60xf32, #tpu.memory_space<vmem>>, vector<1x60xf32>
    %25 = vector.broadcast %24 : vector<1x60xf32> to vector<2x60xf32>
    %26 = arith.addf %23, %25 : vector<2x60xf32>
    %cst_27 = arith.constant -7.000000e+00 : f32
    %cst_28 = arith.constant 7.000000e+00 : f32
    %27 = vector.broadcast %cst_27 : f32 to vector<2x60xf32>
    %28 = arith.maximumf %27, %26 : vector<2x60xf32>
    %29 = vector.broadcast %cst_28 : f32 to vector<2x60xf32>
    %30 = arith.minimumf %29, %28 : vector<2x60xf32>
    %c0_29 = arith.constant 0 : index
    %c0_30 = arith.constant 0 : index
    %31 = vector.load %arg13[%c0_29, %c0_30] : memref<8x4xf32, #tpu.memory_space<vmem>>, vector<8x4xf32>
    %cst_31 = arith.constant dense<0.000000e+00> : vector<2x4xf32>
    %32 = tpu.matmul %9, %31, %cst_31 {dimension_numbers = #tpu.dot_dimension_numbers<[1], [0], [0], [1], [0, 0, 1, 1], [], []>} : vector<2x8xf32>, vector<8x4xf32>, vector<2x4xf32> -> vector<2x4xf32>
    %c0_32 = arith.constant 0 : index
    %c0_33 = arith.constant 0 : index
    %33 = vector.load %arg14[%c0_32, %c0_33] : memref<15x4xf32, #tpu.memory_space<vmem>>, vector<15x4xf32>
    %cst_34 = arith.constant dense<0.000000e+00> : vector<2x4xf32>
    %34 = tpu.matmul %10, %33, %cst_34 {dimension_numbers = #tpu.dot_dimension_numbers<[1], [0], [0], [1], [0, 0, 1, 1], [], []>} : vector<2x15xf32>, vector<15x4xf32>, vector<2x4xf32> -> vector<2x4xf32>
    %35 = arith.addf %32, %34 : vector<2x4xf32>
    %c0_35 = arith.constant 0 : index
    %c0_36 = arith.constant 0 : index
    %36 = vector.load %arg15[%c0_35, %c0_36] : memref<1x4xf32, #tpu.memory_space<vmem>>, vector<1x4xf32>
    %37 = vector.broadcast %36 : vector<1x4xf32> to vector<2x4xf32>
    %38 = arith.addf %35, %37 : vector<2x4xf32>
    %c0_37 = arith.constant 0 : index
    %c0_38 = arith.constant 0 : index
    %39 = vector.load %arg6[%c0_37, %c0_38] : memref<2x15xf32, #tpu.memory_space<vmem>>, vector<2x15xf32>
    %c0_39 = arith.constant 0 : index
    %c0_40 = arith.constant 0 : index
    %40 = vector.load %arg16[%c0_39, %c0_40] : memref<15x60xf32, #tpu.memory_space<vmem>>, vector<15x60xf32>
    %cst_41 = arith.constant dense<0.000000e+00> : vector<2x60xf32>
    %41 = tpu.matmul %39, %40, %cst_41 {dimension_numbers = #tpu.dot_dimension_numbers<[1], [0], [0], [1], [0, 0, 1, 1], [], []>} : vector<2x15xf32>, vector<15x60xf32>, vector<2x60xf32> -> vector<2x60xf32>
    %cst_42 = arith.constant -2.000000e+00 : f32
    %42 = vector.broadcast %cst_42 : f32 to vector<2x60xf32>
    %43 = arith.mulf %42, %30 : vector<2x60xf32>
    %44 = math.exp %43 : vector<2x60xf32>
    %45 = arith.subf %41, %18 : vector<2x60xf32>
    %46 = arith.mulf %45, %45 : vector<2x60xf32>
    %cst_43 = arith.constant -5.000000e-01 : f32
    %47 = vector.broadcast %cst_43 : f32 to vector<2x60xf32>
    %48 = arith.mulf %47, %46 : vector<2x60xf32>
    %49 = arith.mulf %48, %44 : vector<2x60xf32>
    %50 = arith.subf %49, %30 : vector<2x60xf32>
    %cst_44 = arith.constant 0.918938517 : f32
    %51 = vector.broadcast %cst_44 : f32 to vector<2x60xf32>
    %52 = arith.subf %50, %51 : vector<2x60xf32>
    %c0_45 = arith.constant 0 : index
    %c0_46 = arith.constant 0 : index
    %53 = vector.load %arg17[%c0_45, %c0_46] : memref<60x4xf32, #tpu.memory_space<vmem>>, vector<60x4xf32>
    %cst_47 = arith.constant dense<0.000000e+00> : vector<2x4xf32>
    %54 = tpu.matmul %52, %53, %cst_47 {dimension_numbers = #tpu.dot_dimension_numbers<[1], [0], [0], [1], [0, 0, 1, 1], [], []>} : vector<2x60xf32>, vector<60x4xf32>, vector<2x4xf32> -> vector<2x4xf32>
    %cst_48 = arith.constant dense<0xFF800000> : vector<2xf32>
    %55 = vector.multi_reduction <maximumf>, %38, %cst_48 [1] : vector<2x4xf32> to vector<2xf32>
    %56 = vector.shape_cast %55 : vector<2xf32> to vector<2x1xf32>
    %57 = vector.broadcast %56 : vector<2x1xf32> to vector<2x4xf32>
    %58 = arith.subf %38, %57 : vector<2x4xf32>
    %59 = math.exp %58 : vector<2x4xf32>
    %cst_49 = arith.constant dense<0.000000e+00> : vector<2xf32>
    %60 = vector.multi_reduction <add>, %59, %cst_49 [1] : vector<2x4xf32> to vector<2xf32>
    %61 = vector.shape_cast %60 : vector<2xf32> to vector<2x1xf32>
    %62 = math.log %61 : vector<2x1xf32>
    %63 = arith.addf %56, %62 : vector<2x1xf32>
    %64 = vector.broadcast %63 : vector<2x1xf32> to vector<2x4xf32>
    %65 = arith.subf %38, %64 : vector<2x4xf32>
    %66 = arith.addf %54, %65 : vector<2x4xf32>
    %cst_50 = arith.constant dense<0xFF800000> : vector<2xf32>
    %67 = vector.multi_reduction <maximumf>, %66, %cst_50 [1] : vector<2x4xf32> to vector<2xf32>
    %68 = vector.shape_cast %67 : vector<2xf32> to vector<2x1xf32>
    %69 = vector.broadcast %68 : vector<2x1xf32> to vector<2x4xf32>
    %70 = arith.subf %66, %69 : vector<2x4xf32>
    %71 = math.exp %70 : vector<2x4xf32>
    %cst_51 = arith.constant dense<0.000000e+00> : vector<2xf32>
    %72 = vector.multi_reduction <add>, %71, %cst_51 [1] : vector<2x4xf32> to vector<2xf32>
    %73 = vector.shape_cast %72 : vector<2xf32> to vector<2x1xf32>
    %74 = math.log %73 : vector<2x1xf32>
    %75 = arith.addf %68, %74 : vector<2x1xf32>
    %c0_52 = arith.constant 0 : index
    %c0_53 = arith.constant 0 : index
    %76 = vector.load %arg18[%c0_52, %c0_53] : memref<2x1xf32, #tpu.memory_space<vmem>>, vector<2x1xf32>
    tpu.vector_store %arg18[%c0_52, %c0_53], %75 {strides = array<i32>} : memref<2x1xf32, #tpu.memory_space<vmem>>, vector<2x1xf32>,
    return
  }
  func.func @transform_0(%arg0: i32) -> (i32, i32) {
    %c0_i32 = arith.constant 0 : i32
    %c0_i32_0 = arith.constant 0 : i32
    %c0_i32_1 = arith.constant 0 : i32
    return %c0_i32, %c0_i32_0 : i32, i32
  }
  func.func @transform_1(%arg0: i32) -> (i32, i32) {
    %c0_i32 = arith.constant 0 : i32
    %c0_i32_0 = arith.constant 0 : i32
    %c0_i32_1 = arith.constant 0 : i32
    return %c0_i32, %c0_i32_0 : i32, i32
  }
  func.func @transform_2(%arg0: i32) -> (i32, i32) {
    %c0_i32 = arith.constant 0 : i32
    %c0_i32_0 = arith.constant 0 : i32
    %c0_i32_1 = arith.constant 0 : i32
    return %c0_i32, %c0_i32_0 : i32, i32
  }
  func.func @transform_3(%arg0: i32) -> (i32, i32) {
    %c0_i32 = arith.constant 0 : i32
    %c0_i32_0 = arith.constant 0 : i32
    %c0_i32_1 = arith.constant 0 : i32
    return %c0_i32, %c0_i32_0 : i32, i32
  }
  func.func @transform_4(%arg0: i32) -> (i32, i32) {
    %c0_i32 = arith.constant 0 : i32
    %c0_i32_0 = arith.constant 0 : i32
    %c0_i32_1 = arith.constant 0 : i32
    return %c0_i32, %c0_i32_0 : i32, i32
  }
  func.func @transform_5(%arg0: i32) -> (i32, i32) {
    %c0_i32 = arith.constant 0 : i32
    %c0_i32_0 = arith.constant 0 : i32
    %c0_i32_1 = arith.constant 0 : i32
    return %c0_i32, %c0_i32_0 : i32, i32
  }
  func.func @transform_6(%arg0: i32) -> (i32, i32) {
    %c0_i32 = arith.constant 0 : i32
    %c0_i32_0 = arith.constant 0 : i32
    %c0_i32_1 = arith.constant 0 : i32
    return %c0_i32, %c0_i32_0 : i32, i32
  }
  func.func @transform_7(%arg0: i32) -> (i32, i32) {
    %c0_i32 = arith.constant 0 : i32
    %c0_i32_0 = arith.constant 0 : i32
    %c0_i32_1 = arith.constant 0 : i32
    return %c0_i32, %c0_i32_0 : i32, i32
  }
  func.func @transform_8(%arg0: i32) -> (i32, i32) {
    %c0_i32 = arith.constant 0 : i32
    %c0_i32_0 = arith.constant 0 : i32
    %c0_i32_1 = arith.constant 0 : i32
    return %c0_i32, %c0_i32_0 : i32, i32
  }
  func.func @transform_9(%arg0: i32) -> (i32, i32) {
    %c0_i32 = arith.constant 0 : i32
    %c0_i32_0 = arith.constant 0 : i32
    %c0_i32_1 = arith.constant 0 : i32
    return %c0_i32, %c0_i32_0 : i32, i32
  }
  func.func @transform_10(%arg0: i32) -> (i32, i32) {
    %c0_i32 = arith.constant 0 : i32
    %c0_i32_0 = arith.constant 0 : i32
    %c0_i32_1 = arith.constant 0 : i32
    return %c0_i32, %c0_i32_0 : i32, i32
  }
  func.func @transform_11(%arg0: i32) -> (i32, i32) {
    %c0_i32 = arith.constant 0 : i32
    %c0_i32_0 = arith.constant 0 : i32
    %c0_i32_1 = arith.constant 0 : i32
    return %c0_i32, %c0_i32_0 : i32, i32
  }
  func.func @transform_12(%arg0: i32) -> (i32, i32) {
    %c0_i32 = arith.constant 0 : i32
    %c0_i32_0 = arith.constant 0 : i32
    %c0_i32_1 = arith.constant 0 : i32
    return %c0_i32, %c0_i32_0 : i32, i32
  }
  func.func @transform_13(%arg0: i32) -> (i32, i32) {
    %c0_i32 = arith.constant 0 : i32
    %c0_i32_0 = arith.constant 0 : i32
    %c0_i32_1 = arith.constant 0 : i32
    return %c0_i32, %c0_i32_0 : i32, i32
  }
  func.func @transform_14(%arg0: i32) -> (i32, i32) {
    %c0_i32 = arith.constant 0 : i32
    %c0_i32_0 = arith.constant 0 : i32
    %c0_i32_1 = arith.constant 0 : i32
    return %c0_i32, %c0_i32_0 : i32, i32
  }
  func.func @transform_15(%arg0: i32) -> (i32, i32) {
    %c0_i32 = arith.constant 0 : i32
    %c0_i32_0 = arith.constant 0 : i32
    %c0_i32_1 = arith.constant 0 : i32
    return %c0_i32, %c0_i32_0 : i32, i32
  }
  func.func @transform_16(%arg0: i32) -> (i32, i32) {
    %c0_i32 = arith.constant 0 : i32
    %c0_i32_0 = arith.constant 0 : i32
    %c0_i32_1 = arith.constant 0 : i32
    return %c0_i32, %c0_i32_0 : i32, i32
  }
  func.func @transform_17(%arg0: i32) -> (i32, i32) {
    %c0_i32 = arith.constant 0 : i32
    %c0_i32_0 = arith.constant 0 : i32
    %c0_i32_1 = arith.constant 0 : i32
    return %c0_i32, %c0_i32_0 : i32, i32
  }
}

</mosaic_0001>

<bundles_post_ra>
// kernel: net_forward.1
= control target key start
LH: loop header
LB: loop body
LE: loop exit
PB: predicated region body
PF: predicated region fallthrough
CT: control target
= control target key end

     0   :  { %vm324_vm0 = vcmask 1042432   ;;  %vm131_vm1 = vcmask 220160   ;;  %vm948_vm2 = vcmask 1046528   ;;  %vm2051_vm3 = vmmov 0   ;;  %s2713_s1 = inlined_call_operand.vmem [shape: f32[27,8], index: 1, kind: input, shape index: {}]   ;;  %s2714_s0 = inlined_call_operand.vmem [shape: f32[512,27], index: 0, kind: input, shape index: {}]   ;;  %s2715_s3 = inlined_call_operand.vmem [shape: f32[2,512], index: 3, kind: input, shape index: {}]   ;;  %s2716_s2 = inlined_call_operand.vmem [shape: f32[1,8], index: 2, kind: input, shape index: {}]   ;;  %s2717_s7 = inlined_call_operand.vmem [shape: f32[15,60], index: 7, kind: input, shape index: {}]   ;;  %s2718_s4 = inlined_call_operand.vmem [shape: f32[2,15], index: 4, kind: input, shape index: {}]   ;;  %s2719_s6 = inlined_call_operand.vmem [shape: f32[8,60], index: 6, kind: input, shape index: {}]   ;;  %s2720_s10 = inlined_call_operand.vmem [shape: f32[15,60], index: 10, kind: input, shape index: {}]   ;;  %s2721_s9 = inlined_call_operand.vmem [shape: f32[8,60], index: 9, kind: input, shape index: {}]   ;;  %s2722_s13 = inlined_call_operand.vmem [shape: f32[15,4], index: 13, kind: input, shape index: {}]   ;;  %s2723_s12 = inlined_call_operand.vmem [shape: f32[8,4], index: 12, kind: input, shape index: {}]   ;;  %s2724_s15 = inlined_call_operand.vmem [shape: f32[15,60], index: 15, kind: input, shape index: {}]   ;;  %s2725_s5 = inlined_call_operand.vmem [shape: f32[2,15], index: 5, kind: input, shape index: {}]   ;;  %s2726_s16 = inlined_call_operand.vmem [shape: f32[60,4], index: 16, kind: input, shape index: {}]   ;;  %s2727_s11 = inlined_call_operand.vmem [shape: f32[1,60], index: 11, kind: input, shape index: {}]   ;;  %s2728_s14 = inlined_call_operand.vmem [shape: f32[1,4], index: 14, kind: input, shape index: {}]   ;;  %s2729_s8 = inlined_call_operand.vmem [shape: f32[1,60], index: 8, kind: input, shape index: {}]   ;;  %s2730_s17 = inlined_call_operand.vmem [shape: f32[2,1], index: 17, kind: output, shape index: {}]  }
   0x1   :  { %2733 = sst [smem:[#allocation2_spill]] %s2713_s1  ;;  %vm944_vm4 = vcmask 121856   ;;  %vm1022_vm5 = vcmask 64512   ;;  %vm1528_vm6 = vcmask 1043456   ;;  %vm1510_vm7 = vcmask 25600  }
   0x2   :  { %2734 = sst [smem:[#allocation3_spill]] %s2714_s0  ;;  %vm1524_vm8 = vcmask 490496   ;;  %vm1614_vm9 = vcmask 1024  }
   0x3   :  { %s2735_s26 = sld [smem:[#allocation2_spill]] }
   0x4   :  { %s2736_s30 = sld [smem:[#allocation3_spill]] }
   0x9   :  { %v123_v0 = vld [vmem:[%s2735_s26 + $0x18] sm:$0x7]  ;;  %v122_v1 = vld [vmem:[%s2735_s26 + $0x10] sm:$0xff]  ;;  %v121_v3 = vld [vmem:[%s2735_s26 + $0x8] sm:$0xff] }
   0xa   :  { %1869 = vmatprep.subr.msk.mxu0 %vm324_vm0, %v123_v0  ;;  %v56_v2 = vld [vmem:[%s2736_s30] sm:$0xff]  ;;  %v57_v5 = vld [vmem:[%s2736_s30 + $0x8] sm:$0xff]  ;;  %v58_v6 = vld [vmem:[%s2736_s30 + $0x10] sm:$0xff] }
   0xb   :  { %1870 = vmatpush3.msk.msra.mxu0 %vm324_vm0, %v123_v0  ;;  %1877 = vmatprep.mubr.msk.f32.mxu0 %vm131_vm1, %v56_v2  ;;  %v120_v4 = vld [vmem:[%s2735_s26] sm:$0xff]  ;;  %v59_v7 = vld [vmem:[%s2736_s30 + $0x18] sm:$0xff]  ;;  %v61_v9 = vld [vmem:[%s2736_s30 + $0x28] sm:$0xff] }
   0xc   :  { %1871 = vmatprep.subr.mxu0 %v122_v1  ;;  %v60_v8 = vld [vmem:[%s2736_s30 + $0x20] sm:$0xff]  ;;  %v62_v10 = vld [vmem:[%s2736_s30 + $0x30] sm:$0xff]  ;;  %v63_v11 = vld [vmem:[%s2736_s30 + $0x38] sm:$0xff] }
   0xd   :  { %1872 = vmatpush3.msra.mxu0 %v122_v1  ;;  %v64_v12 = vld [vmem:[%s2736_s30 + $0x40] sm:$0xff]  ;;  %v65_v13 = vld [vmem:[%s2736_s30 + $0x48] sm:$0xff]  ;;  %v66_v14 = vld [vmem:[%s2736_s30 + $0x50] sm:$0xff] }
   0xe   :  { %1873 = vmatprep.subr.mxu0 %v121_v3  ;;  %v67_v15 = vld [vmem:[%s2736_s30 + $0x58] sm:$0xff]  ;;  %v68_v16 = vld [vmem:[%s2736_s30 + $0x60] sm:$0xff]  ;;  %v69_v17 = vld [vmem:[%s2736_s30 + $0x68] sm:$0xff] }
   0xf   :  { %1874 = vmatpush3.msra.mxu0 %v121_v3  ;;  %v70_v18 = vld [vmem:[%s2736_s30 + $0x70] sm:$0xff]  ;;  %v71_v19 = vld [vmem:[%s2736_s30 + $0x78] sm:$0xff]  ;;  %v72_v20 = vld [vmem:[%s2736_s30 + $0x80] sm:$0xff] }
  0x10   :  { %1875 = vmatprep.subr.mxu0 %v120_v4  ;;  %v73_v21 = vld [vmem:[%s2736_s30 + $0x88] sm:$0xff]  ;;  %v74_v22 = vld [vmem:[%s2736_s30 + $0x90] sm:$0xff]  ;;  %v75_v23 = vld [vmem:[%s2736_s30 + $0x98] sm:$0xff] }
  0x11   :  { %1876 = vmatpush3.msra.mxu0 %v120_v4  ;;  %v76_v24 = vld [vmem:[%s2736_s30 + $0xa0] sm:$0xff]  ;;  %v77_v25 = vld [vmem:[%s2736_s30 + $0xa8] sm:$0xff]  ;;  %v78_v26 = vld [vmem:[%s2736_s30 + $0xb0] sm:$0xff]  ;;  %v2049_v4 = vmov 1983009808  }
  0x12   :  { %1878 = vmatmul.mubr.msk.f32.vlgmr.msra.gmra.mxu0 %vm131_vm1, %v57_v5  ;;  %v79_v27 = vld [vmem:[%s2736_s30 + $0xb8] sm:$0xff]  ;;  %v80_v28 = vld [vmem:[%s2736_s30 + $0xc0] sm:$0xff]  ;;  %v81_v29 = vld [vmem:[%s2736_s30 + $0xc8] sm:$0xff]  ;;  %v781_v5 = vunpack.c.l.s4 %v2049_v4 }
  0x13   :  { %1880 = vmatprep.mubr.msk.f32.mxu0 %vm131_vm1, %v58_v6  ;;  %v82_v30 = vld [vmem:[%s2736_s30 + $0xd0] sm:$0xff]  ;;  %v83_v31 = vld [vmem:[%s2736_s30 + $0xd8] sm:$0xff]  ;;  %v84_v32 = vld [vmem:[%s2736_s30 + $0xe0] sm:$0xff]  ;;  %v783_v6 = vlaneseq }
  0x14   :  { %v85_v33 = vld [vmem:[%s2736_s30 + $0xe8] sm:$0xff]  ;;  %v86_v34 = vld [vmem:[%s2736_s30 + $0xf0] sm:$0xff]  ;;  %v87_v35 = vld [vmem:[%s2736_s30 + $0xf8] sm:$0xff] }
  0x15   :  { %v88_v36 = vld [vmem:[%s2736_s30 + $0x100] sm:$0xff]  ;;  %v89_v37 = vld [vmem:[%s2736_s30 + $0x108] sm:$0xff]  ;;  %v90_v38 = vld [vmem:[%s2736_s30 + $0x110] sm:$0xff] }
  0x16   :  { %1881 = vmatmul.mubr.msk.f32.gmra.mxu0 %vm131_vm1, %v59_v7  ;;  %v91_v39 = vld [vmem:[%s2736_s30 + $0x118] sm:$0xff]  ;;  %v92_v40 = vld [vmem:[%s2736_s30 + $0x120] sm:$0xff]  ;;  %v93_v41 = vld [vmem:[%s2736_s30 + $0x128] sm:$0xff]  ;;  %v782_v7 = vunpack.c.0.s8 %v781_v5 }
  0x17   :  { %1883 = vmatprep.mubr.msk.f32.mxu0 %vm131_vm1, %v60_v8  ;;  %v94_v42 = vld [vmem:[%s2736_s30 + $0x130] sm:$0xff]  ;;  %v95_v43 = vld [vmem:[%s2736_s30 + $0x138] sm:$0xff]  ;;  %v96_v44 = vld [vmem:[%s2736_s30 + $0x140] sm:$0xff]  ;;  %v784_v8 = vshrl.u32 %v783_v6, 7 }
  0x18   :  { %v97_v45 = vld [vmem:[%s2736_s30 + $0x148] sm:$0xff]  ;;  %v98_v46 = vld [vmem:[%s2736_s30 + $0x150] sm:$0xff]  ;;  %v99_v47 = vld [vmem:[%s2736_s30 + $0x158] sm:$0xff] }
  0x19   :  { %v100_v48 = vld [vmem:[%s2736_s30 + $0x160] sm:$0xff]  ;;  %v101_v49 = vld [vmem:[%s2736_s30 + $0x168] sm:$0xff]  ;;  %v102_v50 = vld [vmem:[%s2736_s30 + $0x170] sm:$0xff] }
  0x1a   :  { %1884 = vmatmul.mubr.msk.f32.gmra.mxu0 %vm131_vm1, %v61_v9  ;;  %v103_v51 = vld [vmem:[%s2736_s30 + $0x178] sm:$0xff]  ;;  %v104_v52 = vld [vmem:[%s2736_s30 + $0x180] sm:$0xff]  ;;  %v105_v53 = vld [vmem:[%s2736_s30 + $0x188] sm:$0xff]  ;;  %v785_v9 = vsub.s32 %v782_v7, %v784_v8 }
  0x1b   :  { %1886 = vmatprep.mubr.msk.f32.mxu0 %vm131_vm1, %v62_v10  ;;  %v106_v54 = vld [vmem:[%s2736_s30 + $0x190] sm:$0xff]  ;;  %v107_v55 = vld [vmem:[%s2736_s30 + $0x198] sm:$0xff]  ;;  %v108_v56 = vld [vmem:[%s2736_s30 + $0x1a0] sm:$0xff] }
  0x1c   :  { %v109_v57 = vld [vmem:[%s2736_s30 + $0x1a8] sm:$0xff]  ;;  %v110_v58 = vld [vmem:[%s2736_s30 + $0x1b0] sm:$0xff]  ;;  %v111_v59 = vld [vmem:[%s2736_s30 + $0x1b8] sm:$0xff] }
  0x1d   :  { %v112_v60 = vld [vmem:[%s2736_s30 + $0x1c0] sm:$0xff]  ;;  %v113_v61 = vld [vmem:[%s2736_s30 + $0x1c8] sm:$0xff]  ;;  %v114_v62 = vld [vmem:[%s2736_s30 + $0x1d0] sm:$0xff] }
  0x1e   :  { %1887 = vmatmul.mubr.msk.f32.gmra.mxu0 %vm131_vm1, %v63_v11  ;;  %v115_v63 = vld [vmem:[%s2736_s30 + $0x1d8] sm:$0xff]  ;;  %v116_v0 = vld [vmem:[%s2736_s30 + $0x1e0] sm:$0xff]  ;;  %v117_v1 = vld [vmem:[%s2736_s30 + $0x1e8] sm:$0xff] }
  0x1f   :  { %1889 = vmatprep.mubr.msk.f32.mxu0 %vm131_vm1, %v64_v12  ;;  %v118_v2 = vld [vmem:[%s2736_s30 + $0x1f0] sm:$0xff]  ;;  %v119_v3 = vld [vmem:[%s2736_s30 + $0x1f8] sm:$0xff]  ;;  %v777_v10 = vld [vmem:[%s2715_s3] sm:$0xff] }
  0x20   :  { %v2413_v11 = vrot.slane %v777_v10, %v785_v9 }
  0x22   :  { %1890 = vmatmul.mubr.msk.f32.gmra.mxu0 %vm131_vm1, %v65_v13  ;;  %v794_v12 = vcombine.high %v2413_v11, %v2413_v11 }
  0x23   :  { %1892 = vmatprep.mubr.msk.f32.mxu0 %vm131_vm1, %v66_v14 }
  0x24   :  { %864 = vmatprep.mubr.f32.mxu1 %v794_v12 }
  0x26   :  { %1893 = vmatmul.mubr.msk.f32.gmra.mxu0 %vm131_vm1, %v67_v15 }
  0x27   :  { %1895 = vmatprep.mubr.msk.f32.mxu0 %vm131_vm1, %v68_v16 }
  0x2a   :  { %1896 = vmatmul.mubr.msk.f32.gmra.mxu0 %vm131_vm1, %v69_v17 }
  0x2b   :  { %1898 = vmatprep.mubr.msk.f32.mxu0 %vm131_vm1, %v70_v18 }
  0x2e   :  { %1899 = vmatmul.mubr.msk.f32.gmra.mxu0 %vm131_vm1, %v71_v19 }
  0x2f   :  { %1901 = vmatprep.mubr.msk.f32.mxu0 %vm131_vm1, %v72_v20 }
  0x32   :  { %1902 = vmatmul.mubr.msk.f32.gmra.mxu0 %vm131_vm1, %v73_v21 }
  0x33   :  { %1904 = vmatprep.mubr.msk.f32.mxu0 %vm131_vm1, %v74_v22 }
  0x36   :  { %1905 = vmatmul.mubr.msk.f32.gmra.mxu0 %vm131_vm1, %v75_v23 }
  0x37   :  { %1907 = vmatprep.mubr.msk.f32.mxu0 %vm131_vm1, %v76_v24 }
  0x3a   :  { %1908 = vmatmul.mubr.msk.f32.gmra.mxu0 %vm131_vm1, %v77_v25 }
  0x3b   :  { %1910 = vmatprep.mubr.msk.f32.mxu0 %vm131_vm1, %v78_v26  ;;  %v779_v26 = vcombine.high %v777_v10, %v777_v10 }
  0x3e   :  { %1911 = vmatmul.mubr.msk.f32.gmra.mxu0 %vm131_vm1, %v79_v27 }
  0x3f   :  { %1913 = vmatprep.mubr.msk.f32.mxu0 %vm131_vm1, %v80_v28 }
  0x42   :  { %1914 = vmatmul.mubr.msk.f32.gmra.mxu0 %vm131_vm1, %v81_v29  ;;  %v2435_v29 = vrot.slane %v779_v26, %v785_v9 }
  0x43   :  { %1916 = vmatprep.mubr.msk.f32.mxu0 %vm131_vm1, %v82_v30 }
  0x46   :  { %1917 = vmatmul.mubr.msk.f32.gmra.mxu0 %vm131_vm1, %v83_v31 }
  0x47   :  { %1919 = vmatprep.mubr.msk.f32.mxu0 %vm131_vm1, %v84_v32 }
  0x4a   :  { %1920 = vmatmul.mubr.msk.f32.gmra.mxu0 %vm131_vm1, %v85_v33 }
  0x4b   :  { %1922 = vmatprep.mubr.msk.f32.mxu0 %vm131_vm1, %v86_v34 }
  0x4e   :  { %1923 = vmatmul.mubr.msk.f32.gmra.mxu0 %vm131_vm1, %v87_v35 }
  0x4f   :  { %1925 = vmatprep.mubr.msk.f32.mxu0 %vm131_vm1, %v88_v36 }
  0x52   :  { %1926 = vmatmul.mubr.msk.f32.gmra.mxu0 %vm131_vm1, %v89_v37 }
  0x53   :  { %1928 = vmatprep.mubr.msk.f32.mxu0 %vm131_vm1, %v90_v38 }
  0x56   :  { %1929 = vmatmul.mubr.msk.f32.gmra.mxu0 %vm131_vm1, %v91_v39 }
  0x57   :  { %1931 = vmatprep.mubr.msk.f32.mxu0 %vm131_vm1, %v92_v40 }
  0x5a   :  { %1932 = vmatmul.mubr.msk.f32.gmra.mxu0 %vm131_vm1, %v93_v41 }
  0x5b   :  { %1934 = vmatprep.mubr.msk.f32.mxu0 %vm131_vm1, %v94_v42 }
  0x5e   :  { %1935 = vmatmul.mubr.msk.f32.gmra.mxu0 %vm131_vm1, %v95_v43 }
  0x5f   :  { %1937 = vmatprep.mubr.msk.f32.mxu0 %vm131_vm1, %v96_v44 }
  0x62   :  { %1938 = vmatmul.mubr.msk.f32.gmra.mxu0 %vm131_vm1, %v97_v45  ;;  %v2452_v45 = vld [vmem:[%s2716_s2] ss:$0 sm:$0xff] }
  0x63   :  { %1940 = vmatprep.mubr.msk.f32.mxu0 %vm131_vm1, %v98_v46 }
  0x66   :  { %1941 = vmatmul.mubr.msk.f32.gmra.mxu0 %vm131_vm1, %v99_v47 }
  0x67   :  { %1943 = vmatprep.mubr.msk.f32.mxu0 %vm131_vm1, %v100_v48 }
  0x6a   :  { %1944 = vmatmul.mubr.msk.f32.gmra.mxu0 %vm131_vm1, %v101_v49 }
  0x6b   :  { %1946 = vmatprep.mubr.msk.f32.mxu0 %vm131_vm1, %v102_v50 }
  0x6e   :  { %1947 = vmatmul.mubr.msk.f32.gmra.mxu0 %vm131_vm1, %v103_v51 }
  0x6f   :  { %1949 = vmatprep.mubr.msk.f32.mxu0 %vm131_vm1, %v104_v52 }
  0x72   :  { %1950 = vmatmul.mubr.msk.f32.gmra.mxu0 %vm131_vm1, %v105_v53 }
  0x73   :  { %1952 = vmatprep.mubr.msk.f32.mxu0 %vm131_vm1, %v106_v54 }
  0x76   :  { %1953 = vmatmul.mubr.msk.f32.gmra.mxu0 %vm131_vm1, %v107_v55 }
  0x77   :  { %1955 = vmatprep.mubr.msk.f32.mxu0 %vm131_vm1, %v108_v56 }
  0x7a   :  { %1956 = vmatmul.mubr.msk.f32.gmra.mxu0 %vm131_vm1, %v109_v57 }
  0x7b   :  { %1958 = vmatprep.mubr.msk.f32.mxu0 %vm131_vm1, %v110_v58 }
  0x7e   :  { %1959 = vmatmul.mubr.msk.f32.gmra.mxu0 %vm131_vm1, %v111_v59 }
  0x7f   :  { %1961 = vmatprep.mubr.msk.f32.mxu0 %vm131_vm1, %v112_v60 }
  0x82   :  { %1962 = vmatmul.mubr.msk.f32.gmra.mxu0 %vm131_vm1, %v113_v61 }
  0x83   :  { %1964 = vmatprep.mubr.msk.f32.mxu0 %vm131_vm1, %v114_v62 }
  0x86   :  { %1965 = vmatmul.mubr.msk.f32.gmra.mxu0 %vm131_vm1, %v115_v63 }
  0x87   :  { %1967 = vmatprep.mubr.msk.f32.mxu0 %vm131_vm1, %v116_v0 }
  0x8a   :  { %1968 = vmatmul.mubr.msk.f32.gmra.mxu0 %vm131_vm1, %v117_v1 }
  0x8b   :  { %1970 = vmatprep.mubr.msk.f32.mxu0 %vm131_vm1, %v118_v2 }
  0x8e   :  { %1971 = vmatmul.mubr.msk.f32.gmra.mxu0 %vm131_vm1, %v119_v3 }
  0xd2   :  { %v2417_v13 = vpop.f32.mrf.mxu0 }
  0xd4   :  { %v2419_v14 = vpop.f32.mrf.mxu0 }
  0xd6   :  { %v2421_v15 = vpop.f32.mrf.mxu0 }
  0xd8   :  { %v2423_v16 = vpop.f32.mrf.mxu0 }
  0xda   :  { %v2425_v17 = vpop.f32.mrf.mxu0 }
  0xdc   :  { %v2427_v18 = vpop.f32.mrf.mxu0 }
  0xde   :  { %v2429_v19 = vpop.f32.mrf.mxu0 }
  0xe0   :  { %v2431_v20 = vpop.f32.mrf.mxu0 }
  0xe2   :  { %v1891_v21 = vpop.f32.mrf.mxu0 }
  0xe3   :  { %v440_v10 = vadd.f32 %v1891_v21, %v2452_v45  ;;  %v430_v21 = vadd.f32 %v2429_v19, %v2452_v45  ;;  %v420_v19 = vadd.f32 %v2425_v17, %v2452_v45 }
  0xe4   :  { %v2433_v22 = vpop.f32.mrf.mxu0 }
  0xe6   :  { %v1894_v23 = vpop.f32.mrf.mxu0 }
  0xe7   :  { %v450_v0 = vadd.f32 %v1894_v23, %v2452_v45 }
  0xe8   :  { %v444_v24 = vpop.f32.mrf.mxu0 }
  0xe9   :  { %v445_v5 = vadd.f32 %v2452_v45, %v444_v24  ;;  %v724_v12 = vmax.f32 %v450_v0, 0.0  ;;  %v435_v24 = vadd.f32 %v2452_v45, %v2433_v22  ;;  %v425_v22 = vadd.f32 %v2452_v45, %v2431_v20 }
  0xea   :  { %v1897_v25 = vpop.f32.mrf.mxu0 }
  0xeb   :  { %v460_v54 = vadd.f32 %v1897_v25, %v2452_v45 }
  0xec   :  { %v454_v27 = vpop.f32.mrf.mxu0 }
  0xed   :  { %v455_v59 = vadd.f32 %v2452_v45, %v454_v27  ;;  %v726_v1 = vmax.f32 %v460_v54, 0.0  ;;  %v723_v27 = vmax.f32 %v445_v5, 0.0  ;;  %v718_v54 = vmax.f32 %v420_v19, 0.0 }
  0xee   :  { %v1900_v28 = vpop.f32.mrf.mxu0 }
  0xef   :  { %v470_v46 = vadd.f32 %v1900_v28, %v2452_v45  ;;  %v725_v6 = vmax.f32 %v455_v59, 0.0 }
  0xf0   :  { %v464_v30 = vpop.f32.mrf.mxu0 }
  0xf1   :  { %v465_v49 = vadd.f32 %v2452_v45, %v464_v30  ;;  %v728_v55 = vmax.f32 %v470_v46, 0.0 }
  0xf2   :  { %v2437_v31 = vpop.f32.mrf.mxu0 }
  0xf3   :  { %v727_v60 = vmax.f32 %v465_v49, 0.0 }
  0xf4   :  { %v2439_v32 = vpop.f32.mrf.mxu0 }
  0xf6   :  { %v2441_v33 = vpop.f32.mrf.mxu0 }
  0xf8   :  { %v2443_v34 = vpop.f32.mrf.mxu0 }
  0xfa   :  { %v2445_v35 = vpop.f32.mrf.mxu0 }
  0xfc   :  { %v2447_v36 = vpop.f32.mrf.mxu0 }
  0xfe   :  { %v1912_v37 = vpop.f32.mrf.mxu0 }
  0xff   :  { %v510_v30 = vadd.f32 %v1912_v37, %v2452_v45  ;;  %v500_v37 = vadd.f32 %v2445_v35, %v2452_v45  ;;  %v490_v35 = vadd.f32 %v2441_v33, %v2452_v45  ;;  %v480_v33 = vadd.f32 %v2437_v31, %v2452_v45 }
 0x100   :  { %v504_v38 = vpop.f32.mrf.mxu0 }
 0x101   :  { %v734_v17 = vmax.f32 %v500_v37, 0.0  ;;  %v730_v31 = vmax.f32 %v480_v33, 0.0 }
 0x102   :  { %v1915_v39 = vpop.f32.mrf.mxu0 }
 0x103   :  { %v520_v8 = vadd.f32 %v1915_v39, %v2452_v45 }
 0x104   :  { %v514_v40 = vpop.f32.mrf.mxu0 }
 0x105   :  { %v515_v25 = vadd.f32 %v2452_v45, %v514_v40  ;;  %v738_v39 = vmax.f32 %v520_v8, 0.0  ;;  %v505_v40 = vadd.f32 %v2452_v45, %v504_v38  ;;  %v495_v38 = vadd.f32 %v2452_v45, %v2447_v36 }
 0x106   :  { %v1918_v41 = vpop.f32.mrf.mxu0  ;;  %v485_v36 = vadd.f32 %v2452_v45, %v2443_v34  ;;  %v475_v34 = vadd.f32 %v2452_v45, %v2439_v32  ;;  %v795_v32 = vcombine.high %v2435_v29, %v2435_v29 }
 0x107   :  { %v530_v62 = vadd.f32 %v1918_v41, %v2452_v45  ;;  %v722_v41 = vmax.f32 %v440_v10, 0.0  ;;  %v735_v20 = vmax.f32 %v505_v40, 0.0 }
 0x108   :  { %v524_v42 = vpop.f32.mrf.mxu0  ;;  %v731_v0 = vmax.f32 %v485_v36, 0.0 }
 0x109   :  { %v525_v3 = vadd.f32 %v2452_v45, %v524_v42  ;;  %v740_v9 = vmax.f32 %v530_v62, 0.0 }
 0x10a   :  { %v1921_v43 = vpop.f32.mrf.mxu0 }
 0x10b   :  { %v540_v51 = vadd.f32 %v1921_v43, %v2452_v45  ;;  %v739_v26 = vmax.f32 %v525_v3, 0.0  ;;  %v737_v43 = vmax.f32 %v515_v25, 0.0 }
 0x10c   :  { %v534_v44 = vpop.f32.mrf.mxu0 }
 0x10d   :  { %v535_v57 = vadd.f32 %v2452_v45, %v534_v44  ;;  %v742_v63 = vmax.f32 %v540_v51, 0.0  ;;  %v721_v44 = vmax.f32 %v435_v24, 0.0  ;;  %v719_v51 = vmax.f32 %v425_v22, 0.0 }
 0x10e   :  { %v1924_v47 = vpop.f32.mrf.mxu0 }
 0x10f   :  { %v550_v48 = vadd.f32 %v1924_v47, %v2452_v45  ;;  %v741_v4 = vmax.f32 %v535_v57, 0.0  ;;  %v736_v47 = vmax.f32 %v510_v30, 0.0  ;;  %v405_v57 = vadd.f32 %v2452_v45, %v2423_v16 }
 0x110   :  { %v544_v50 = vpop.f32.mrf.mxu0  ;;  %v395_v16 = vadd.f32 %v2452_v45, %v2419_v14 }
 0x111   :  { %v545_v52 = vadd.f32 %v2452_v45, %v544_v50  ;;  %v744_v53 = vmax.f32 %v550_v48, 0.0  ;;  %v720_v48 = vmax.f32 %v430_v21, 0.0  ;;  %v415_v50 = vadd.f32 %v2452_v45, %v2427_v18 }
 0x112   :  { %v2460_v56 = vpop.f32.mrf.mxu0  ;;  %v733_v18 = vmax.f32 %v495_v38, 0.0 }
 0x113   :  { %v743_v58 = vmax.f32 %v545_v52, 0.0  ;;  %1772 = vmatprep.subr.mxu1 %v744_v53  ;;  %v410_v53 = vadd.f32 %v2421_v15, %v2452_v45  ;;  %v732_v15 = vmax.f32 %v490_v35, 0.0 }
 0x114   :  { %v2464_v61 = vpop.f32.mrf.mxu0  ;;  %1773 = vmatpush3.msra.mxu1 %v728_v55 }
 0x115   :  { %1774 = vmatprep.subr.mxu1 %v743_v58  ;;  %v717_v58 = vmax.f32 %v415_v50, 0.0  ;;  %v716_v62 = vmax.f32 %v410_v53, 0.0 }
 0x116   :  { %v2468_v2 = vpop.f32.mrf.mxu0  ;;  %1775 = vmatpush3.msra.mxu1 %v727_v60  ;;  %v400_v60 = vadd.f32 %v2417_v13, %v2452_v45  ;;  %v729_v13 = vmax.f32 %v475_v34, 0.0 }
 0x117   :  { %1776 = vmatprep.subr.mxu1 %v742_v63 }
 0x118   :  { %v2472_v7 = vpop.f32.mrf.mxu0  ;;  %1777 = vmatpush3.msra.mxu1 %v726_v1  ;;  %v715_v1 = vmax.f32 %v405_v57, 0.0 }
 0x119   :  { %1778 = vmatprep.subr.mxu1 %v741_v4  ;;  %v714_v4 = vmax.f32 %v400_v60, 0.0 }
 0x11a   :  { %v2476_v23 = vpop.f32.mrf.mxu0  ;;  %1779 = vmatpush3.msra.mxu1 %v725_v6  ;;  %v713_v6 = vmax.f32 %v395_v16, 0.0 }
 0x11b   :  { %1780 = vmatprep.subr.mxu1 %v740_v9 }
 0x11c   :  { %v2481_v28 = vpop.f32.mrf.mxu0  ;;  %1781 = vmatpush3.msra.mxu1 %v724_v12 }
 0x11d   :  { %1782 = vmatprep.subr.mxu1 %v739_v26 }
 0x11e   :  { %v2486_v42 = vpop.f32.mrf.mxu0  ;;  %1783 = vmatpush3.msra.mxu1 %v723_v27 }
 0x11f   :  { %1784 = vmatprep.subr.mxu1 %v738_v39 }
 0x120   :  { %v2491_v46 = vpop.f32.mrf.mxu0  ;;  %1785 = vmatpush3.msra.mxu1 %v722_v41 }
 0x121   :  { %1786 = vmatprep.subr.mxu1 %v737_v43 }
 0x122   :  { %v2497_v49 = vpop.f32.mrf.mxu0  ;;  %1787 = vmatpush3.msra.mxu1 %v721_v44 }
 0x123   :  { %1788 = vmatprep.subr.mxu1 %v736_v47  ;;  %v600_v34 = vadd.f32 %v2497_v49, %v2452_v45 }
 0x124   :  { %v2503_v52 = vpop.f32.mrf.mxu0  ;;  %1789 = vmatpush3.msra.mxu1 %v720_v48 }
 0x125   :  { %1790 = vmatprep.subr.mxu1 %v735_v20 }
 0x126   :  { %v2509_v55 = vpop.f32.mrf.mxu0  ;;  %1791 = vmatpush3.msra.mxu1 %v719_v51 }
 0x127   :  { %1792 = vmatprep.subr.mxu1 %v734_v17 }
 0x128   :  { %v2515_v59 = vpop.f32.mrf.mxu0  ;;  %1793 = vmatpush3.msra.mxu1 %v718_v54 }
 0x129   :  { %1794 = vmatprep.subr.mxu1 %v733_v18  ;;  %v610_v18 = vadd.f32 %v2509_v55, %v2452_v45 }
 0x12a   :  { %v1945_v63 = vpop.f32.mrf.mxu0  ;;  %1795 = vmatpush3.msra.mxu1 %v717_v58 }
 0x12b   :  { %1796 = vmatprep.subr.mxu1 %v732_v15  ;;  %v620_v20 = vadd.f32 %v1945_v63, %v2452_v45  ;;  %v605_v15 = vadd.f32 %v2452_v45, %v2515_v59 }
 0x12c   :  { %v614_v3 = vpop.f32.mrf.mxu0  ;;  %1797 = vmatpush3.msra.mxu1 %v716_v62 }
 0x12d   :  { %1798 = vmatprep.subr.mxu1 %v731_v0  ;;  %v615_v17 = vadd.f32 %v2452_v45, %v614_v3  ;;  %v758_v57 = vmax.f32 %v620_v20, 0.0  ;;  %v756_v0 = vmax.f32 %v610_v18, 0.0  ;;  %v755_v3 = vmax.f32 %v605_v15, 0.0  ;;  %v1104_v18 = vld [vmem:[%s2721_s9] sm:$0xff]  ;;  %v1416_v15 = vld [vmem:[%s2724_s15 + $0x8] sm:$0x7f] }
 0x12e   :  { %v1948_v5 = vpop.f32.mrf.mxu0  ;;  %1799 = vmatpush3.msra.mxu1 %v715_v1  ;;  %v595_v1 = vadd.f32 %v2452_v45, %v2503_v52 }
 0x12f   :  { %1800 = vmatprep.subr.mxu1 %v730_v31  ;;  %v757_v60 = vmax.f32 %v615_v17, 0.0 }
 0x130   :  { %v624_v8 = vpop.f32.mrf.mxu0  ;;  %1801 = vmatpush3.msra.mxu1 %v714_v4  ;;  %v590_v4 = vadd.f32 %v2486_v42, %v2452_v45 }
 0x131   :  { %1802 = vmatprep.subr.mxu1 %v729_v13  ;;  %v625_v37 = vadd.f32 %v2452_v45, %v624_v8  ;;  %v753_v8 = vmax.f32 %v595_v1, 0.0  ;;  %v1506_v1 = vld [vmem:[%s2726_s16 + $0x20] sm:$0xff] }
 0x132   :  { %v2527_v9 = vpop.f32.mrf.mxu0  ;;  %1803 = vmatpush3.msra.mxu1 %v713_v6  ;;  %v585_v6 = vadd.f32 %v2452_v45, %v2491_v46 }
 0x133   :  { %865 = vmatmul.mubr.f32.vlgmr.msra.gmra.mxu1 %v2413_v11  ;;  %v630_v11 = vadd.f32 %v1948_v5, %v2452_v45  ;;  %v759_v53 = vmax.f32 %v625_v37, 0.0  ;;  %v754_v5 = vmax.f32 %v600_v34, 0.0 }
 0x134   :  { %v2530_v14 = vpop.f32.mrf.mxu0  ;;  %934 = vmatprep.mubr.f32.mxu1 %v795_v32  ;;  %v751_v46 = vmax.f32 %v585_v6, 0.0 }
 0x135   :  { %v760_v50 = vmax.f32 %v630_v11, 0.0 }
 0x136   :  { %v2532_v10 = vpop.f32.mrf.mxu0 }
 0x138   :  { %v2534_v12 = vpop.f32.mrf.mxu0 }
 0x13a   :  { %v1957_v25 = vpop.f32.mrf.mxu0 }
 0x13b   :  { %v660_v52 = vadd.f32 %v1957_v25, %v2452_v45  ;;  %v650_v25 = vadd.f32 %v2532_v10, %v2452_v45  ;;  %v640_v10 = vadd.f32 %v2527_v9, %v2452_v45 }
 0x13c   :  { %v2536_v26 = vpop.f32.mrf.mxu0 }
 0x13d   :  { %v655_v42 = vadd.f32 %v2452_v45, %v2536_v26  ;;  %v645_v26 = vadd.f32 %v2452_v45, %v2534_v12  ;;  %v764_v11 = vmax.f32 %v650_v25, 0.0  ;;  %v635_v12 = vadd.f32 %v2452_v45, %v2530_v14  ;;  %v941_v14 = vld [vmem:[%s2719_s6] sm:$0xff] }
 0x13e   :  { %v1960_v24 = vpop.f32.mrf.mxu0 }
 0x13f   :  { %v670_v59 = vadd.f32 %v1960_v24, %v2452_v45  ;;  %v580_v24 = vadd.f32 %v2476_v23, %v2452_v45  ;;  %v570_v23 = vadd.f32 %v2468_v2, %v2452_v45  ;;  %v560_v2 = vadd.f32 %v2460_v56, %v2452_v45 }
 0x140   :  { %v664_v27 = vpop.f32.mrf.mxu0  ;;  %v2050_v56 = vmov 0.0  }
 0x141   :  { %v665_v49 = vadd.f32 %v2452_v45, %v664_v27  ;;  %v768_v32 = vmax.f32 %v670_v59, 0.0  ;;  %v746_v9 = vmax.f32 %v560_v2, 0.0  ;;  %v1504_v59 = vld [vmem:[%s2726_s16 + $0x10] sm:$0xff] }
 0x142   :  { %v1963_v30 = vpop.f32.mrf.mxu0 }
 0x143   :  { %v680_v62 = vadd.f32 %v1963_v30, %v2452_v45  ;;  %v752_v30 = vmax.f32 %v590_v4, 0.0  ;;  %v767_v27 = vmax.f32 %v665_v49, 0.0  ;;  %v1502_v4 = vld [vmem:[%s2726_s16] sm:$0xff] }
 0x144   :  { %v674_v39 = vpop.f32.mrf.mxu0 }
 0x145   :  { %v675_v55 = vadd.f32 %v2452_v45, %v674_v39  ;;  %v770_v31 = vmax.f32 %v680_v62, 0.0  ;;  %v575_v39 = vadd.f32 %v2452_v45, %v2481_v28  ;;  %v565_v28 = vadd.f32 %v2452_v45, %v2472_v7  ;;  %v1414_v62 = vld [vmem:[%s2725_s5] sm:$0x3] }
 0x146   :  { %v1966_v21 = vpop.f32.mrf.mxu0  ;;  %v555_v7 = vadd.f32 %v2452_v45, %v2464_v61  ;;  %v942_v61 = vld [vmem:[%s2717_s7] sm:$0xff] }
 0x147   :  { %v690_v54 = vadd.f32 %v1966_v21, %v2452_v45  ;;  %v769_v13 = vmax.f32 %v675_v55, 0.0  ;;  %v766_v21 = vmax.f32 %v660_v52, 0.0  ;;  %v747_v37 = vmax.f32 %v565_v28, 0.0  ;;  %v1508_v55 = vld [vmem:[%s2726_s16 + $0x30] sm:$0xff]  ;;  %v1693_v52 = vld [vmem:[%s2727_s11] ss:$0 sm:$0xff] }
 0x148   :  { %v684_v41 = vpop.f32.mrf.mxu0  ;;  %v1689_v28 = vld [vmem:[%s2729_s8] ss:$0 sm:$0xff] }
 0x149   :  { %v685_v58 = vadd.f32 %v2452_v45, %v684_v41  ;;  %v772_v63 = vmax.f32 %v690_v54, 0.0  ;;  %v750_v41 = vmax.f32 %v580_v24, 0.0  ;;  %v1106_v54 = vld [vmem:[%s2720_s10 + $0x8] sm:$0x7f] }
 0x14a   :  { %v1969_v40 = vpop.f32.mrf.mxu0 }
 0x14b   :  { %v700_v19 = vadd.f32 %v1969_v40, %v2452_v45  ;;  %v771_v16 = vmax.f32 %v685_v58, 0.0  ;;  %v765_v40 = vmax.f32 %v655_v42, 0.0  ;;  %v1261_v58 = vld [vmem:[%s2722_s13] sm:$0xff] }
 0x14c   :  { %v694_v43 = vpop.f32.mrf.mxu0 }
 0x14d   :  { %v695_v51 = vadd.f32 %v2452_v45, %v694_v43  ;;  %v774_v36 = vmax.f32 %v700_v19, 0.0  ;;  %v749_v43 = vmax.f32 %v575_v39, 0.0  ;;  %v761_v19 = vmax.f32 %v635_v12, 0.0 }
 0x14e   :  { %v1972_v22 = vpop.f32.mrf.mxu0 }
 0x14f   :  { %v710_v44 = vadd.f32 %v1972_v22, %v2452_v45  ;;  %v773_v33 = vmax.f32 %v695_v51, 0.0  ;;  %v748_v22 = vmax.f32 %v570_v23, 0.0 }
 0x150   :  { %v704_v47 = vpop.f32.mrf.mxu0 }
 0x151   :  { %v776_v48 = vmax.f32 %v710_v44, 0.0  ;;  %v705_v38 = vadd.f32 %v2452_v45, %v704_v47  ;;  %v763_v44 = vmax.f32 %v645_v26, 0.0  ;;  %v762_v47 = vmax.f32 %v640_v10, 0.0  ;;  %v943_v45 = vld [vmem:[%s2717_s7 + $0x8] sm:$0x7f] }
 0x153   :  { %v775_v35 = vmax.f32 %v705_v38, 0.0  ;;  %1807 = vmatprep.subr.mxu1 %v776_v48  ;;  %v745_v48 = vmax.f32 %v555_v7, 0.0 }
 0x154   :  { %1808 = vmatpush3.msra.mxu1 %v760_v50 }
 0x155   :  { %1809 = vmatprep.subr.mxu1 %v775_v35 }
 0x156   :  { %1810 = vmatpush3.msra.mxu1 %v759_v53 }
 0x157   :  { %1811 = vmatprep.subr.mxu1 %v774_v36  ;;  %v1105_v36 = vld [vmem:[%s2720_s10] sm:$0xff] }
 0x158   :  { %1812 = vmatpush3.msra.mxu1 %v758_v57  ;;  %v1262_v57 = vld [vmem:[%s2722_s13 + $0x8] sm:$0x7f] }
 0x159   :  { %1813 = vmatprep.subr.mxu1 %v773_v33  ;;  %v1260_v33 = vld [vmem:[%s2723_s12] sm:$0xff] }
 0x15a   :  { %1814 = vmatpush3.msra.mxu1 %v757_v60  ;;  %v1415_v60 = vld [vmem:[%s2724_s15] sm:$0xff] }
 0x15b   :  { %1815 = vmatprep.subr.mxu1 %v772_v63 }
 0x15c   :  { %1816 = vmatpush3.msra.mxu1 %v756_v0  ;;  %v1509_v0 = vld [vmem:[%s2726_s16 + $0x38] sm:$0xf] }
 0x15d   :  { %1817 = vmatprep.subr.mxu1 %v771_v16  ;;  %v1507_v16 = vld [vmem:[%s2726_s16 + $0x28] sm:$0xff] }
 0x15e   :  { %1818 = vmatpush3.msra.mxu1 %v755_v3  ;;  %v1505_v3 = vld [vmem:[%s2726_s16 + $0x18] sm:$0xff] }
 0x15f   :  { %1819 = vmatprep.subr.mxu1 %v770_v31  ;;  %v1503_v31 = vld [vmem:[%s2726_s16 + $0x8] sm:$0xff] }
 0x160   :  { %1820 = vmatpush3.msra.mxu1 %v754_v5 }
 0x161   :  { %1821 = vmatprep.subr.mxu1 %v769_v13 }
 0x162   :  { %1822 = vmatpush3.msra.mxu1 %v753_v8 }
 0x163   :  { %1823 = vmatprep.subr.mxu1 %v768_v32 }
 0x164   :  { %1824 = vmatpush3.msra.mxu1 %v752_v30 }
 0x165   :  { %1825 = vmatprep.subr.mxu1 %v767_v27 }
 0x166   :  { %1826 = vmatpush3.msra.mxu1 %v751_v46 }
 0x167   :  { %1827 = vmatprep.subr.mxu1 %v766_v21  ;;  %v1698_v21 = vld [vmem:[%s2728_s14] ss:$0 sm:$0xff] }
 0x168   :  { %1828 = vmatpush3.msra.mxu1 %v750_v41 }
 0x169   :  { %1829 = vmatprep.subr.mxu1 %v765_v40 }
 0x16a   :  { %1830 = vmatpush3.msra.mxu1 %v749_v43 }
 0x16b   :  { %1831 = vmatprep.subr.mxu1 %v764_v11 }
 0x16c   :  { %1832 = vmatpush3.msra.mxu1 %v748_v22 }
 0x16d   :  { %1833 = vmatprep.subr.mxu1 %v763_v44 }
 0x16e   :  { %1834 = vmatpush3.msra.mxu1 %v747_v37 }
 0x16f   :  { %1835 = vmatprep.subr.mxu1 %v762_v47 }
 0x170   :  { %1836 = vmatpush3.msra.mxu1 %v746_v9 }
 0x171   :  { %1837 = vmatprep.subr.mxu1 %v761_v19 }
 0x172   :  { %1838 = vmatpush3.msra.mxu1 %v745_v48 }
 0x173   :  { %935 = vmatmul.mubr.f32.vlgmr.msra.gmra.mxu1 %v2435_v29  ;;  %1973 = vmatprep.subr.mxu1 %v2050_v56  ;;  %v940_v29 = vld [vmem:[%s2718_s4] sm:$0x3] }
 0x174   :  { %1974 = vmatpush3.msk.msra.mxu1 %vm948_vm2, %v943_v45  ;;  %1977 = vmatprep.mubr.msk.f32.mxu1 %vm2051_vm3, %v2050_v56 }
 0x175   :  { %1975 = vmatprep.subr.mxu1 %v2050_v56 }
 0x176   :  { %1976 = vmatpush3.msra.mxu1 %v942_v61 }
 0x177   :  { %1978 = vmatmul.mubr.msk.f32.vlgmr.msra.gmra.mxu1 %vm944_vm4, %v940_v29  ;;  %1980 = vmatprep.subr.mxu1 %v2050_v56 }
 0x178   :  { %1982 = vmatprep.mubr.msk.f32.mxu1 %vm2051_vm3, %v2050_v56  ;;  %1981 = vmatpush3.msra.mxu1 %v941_v14 }
 0x179   :  { %1985 = vmatprep.subr.mxu1 %v2050_v56 }
 0x1f3   :  { %v1804_v38 = vpop.f32.mrf.mxu1 }
 0x1f5   :  { %v1805_v20 = vpop.f32.mrf.mxu1 }
 0x1f6   :  { %v1806_v35 = vadd.f32 %v1805_v20, %v1804_v38 }
 0x233   :  { %v1839_v50 = vpop.f32.mrf.mxu1 }
 0x235   :  { %v1840_v51 = vpop.f32.mrf.mxu1 }
 0x236   :  { %v1841_v17 = vadd.f32 %v1840_v51, %v1839_v50 }
 0x237   :  { %v1018_v63 = vpop.f32.mrf.mxu1 }
 0x238   :  { %v937_v53 = vadd.f32 %v1841_v17, %v1806_v35 }
 0x239   :  { %v1979_v34 = vpop.f32.mrf.mxu1 }
 0x23a   :  { %1983 = vmatmul.mubr.msk.f32.vlgmr.msra.gmra.mxu1 %vm1022_vm5, %v937_v53 }
 0x23b   :  { %1986 = vmatpush3.msk.msra.mxu1 %vm948_vm2, %v1106_v54  ;;  %1989 = vmatprep.mubr.msk.f32.mxu1 %vm2051_vm3, %v2050_v56 }
 0x23c   :  { %1987 = vmatprep.subr.mxu1 %v2050_v56 }
 0x23d   :  { %1988 = vmatpush3.msra.mxu1 %v1105_v36 }
 0x23e   :  { %1992 = vmatprep.subr.mxu1 %v2050_v56  ;;  %1990 = vmatmul.mubr.msk.f32.vlgmr.msra.gmra.mxu1 %vm944_vm4, %v940_v29 }
 0x23f   :  { %1993 = vmatpush3.msra.mxu1 %v1104_v18  ;;  %1994 = vmatprep.mubr.msk.f32.mxu1 %vm2051_vm3, %v2050_v56 }
 0x240   :  { %1997 = vmatprep.subr.mxu1 %v2050_v56 }
 0x242   :  { %1995 = vmatmul.mubr.msk.f32.vlgmr.msra.gmra.mxu1 %vm1022_vm5, %v937_v53 }
 0x243   :  { %1998 = vmatpush3.msk.msra.mxu1 %vm948_vm2, %v1262_v57  ;;  %2001 = vmatprep.mubr.msk.f32.mxu1 %vm2051_vm3, %v2050_v56 }
 0x244   :  { %1999 = vmatprep.subr.mxu1 %v2050_v56 }
 0x245   :  { %2000 = vmatpush3.msra.mxu1 %v1261_v58 }
 0x246   :  { %2004 = vmatprep.subr.mxu1 %v2050_v56  ;;  %2002 = vmatmul.mubr.msk.f32.vlgmr.msra.gmra.mxu1 %vm944_vm4, %v940_v29 }
 0x247   :  { %2005 = vmatpush3.msra.mxu1 %v1260_v33  ;;  %2006 = vmatprep.mubr.msk.f32.mxu1 %vm2051_vm3, %v2050_v56 }
 0x248   :  { %2009 = vmatprep.subr.mxu1 %v2050_v56 }
 0x24a   :  { %2007 = vmatmul.mubr.msk.f32.vlgmr.msra.gmra.mxu1 %vm1022_vm5, %v937_v53 }
 0x24b   :  { %2010 = vmatpush3.msk.msra.mxu1 %vm948_vm2, %v1416_v15  ;;  %2013 = vmatprep.mubr.msk.f32.mxu1 %vm2051_vm3, %v2050_v56 }
 0x24c   :  { %2011 = vmatprep.subr.mxu1 %v2050_v56 }
 0x24d   :  { %2012 = vmatpush3.msra.mxu1 %v1415_v60 }
 0x24e   :  { %2014 = vmatmul.mubr.msk.f32.vlgmr.msra.gmra.mxu1 %vm944_vm4, %v1414_v62  ;;  %2016 = vmatprep.subr.mxu1 %v2050_v56 }
 0x24f   :  { %2032 = vmatprep.mubr.msk.f32.mxu1 %vm2051_vm3, %v2050_v56  ;;  %2017 = vmatpush3.msk.msra.mxu1 %vm1528_vm6, %v1509_v0 }
 0x250   :  { %2018 = vmatprep.subr.mxu1 %v2050_v56 }
 0x251   :  { %2019 = vmatpush3.msra.mxu1 %v1508_v55 }
 0x252   :  { %2020 = vmatprep.subr.mxu1 %v2050_v56 }
 0x253   :  { %2021 = vmatpush3.msra.mxu1 %v1507_v16 }
 0x254   :  { %2022 = vmatprep.subr.mxu1 %v2050_v56 }
 0x255   :  { %2023 = vmatpush3.msra.mxu1 %v1506_v1 }
 0x256   :  { %2024 = vmatprep.subr.mxu1 %v2050_v56 }
 0x257   :  { %2025 = vmatpush3.msra.mxu1 %v1505_v3 }
 0x258   :  { %2026 = vmatprep.subr.mxu1 %v2050_v56 }
 0x259   :  { %2027 = vmatpush3.msra.mxu1 %v1504_v59 }
 0x25a   :  { %2028 = vmatprep.subr.mxu1 %v2050_v56 }
 0x25b   :  { %2029 = vmatpush3.msra.mxu1 %v1503_v31 }
 0x25c   :  { %2030 = vmatprep.subr.mxu1 %v2050_v56 }
 0x25d   :  { %2031 = vmatpush3.msra.mxu1 %v1502_v4 }
 0x2fa   :  { %v1092_v5 = vpop.f32.mrf.mxu1 }
 0x2fb   :  { %v1093_v23 = vadd.f32 %v1092_v5, %v1018_v63 }
 0x2fc   :  { %v1984_v49 = vpop.f32.mrf.mxu1 }
 0x2fd   :  { %v1103_v11 = vadd.f32 %v1689_v28, %v1093_v23 }
 0x2fe   :  { %v1176_v13 = vpop.f32.mrf.mxu1 }
 0x300   :  { %v1991_v6 = vpop.f32.mrf.mxu1 }
 0x302   :  { %v1246_v8 = vpop.f32.mrf.mxu1 }
 0x303   :  { %v1247_v32 = vadd.f32 %v1246_v8, %v1176_v13 }
 0x304   :  { %v1996_v24 = vpop.f32.mrf.mxu1 }
 0x305   :  { %v1257_v30 = vadd.f32 %v1693_v52, %v1247_v32 }
 0x306   :  { %v1332_v42 = vpop.f32.mrf.mxu1 }
 0x307   :  { %v1694_v27 = vclamps-f32 %v1257_v30, 7.0 }
 0x308   :  { %v2003_v39 = vpop.f32.mrf.mxu1 }
 0x309   :  { %v1493_v46 = vmul.f32 -2.0, %v1694_v27 }
 0x30a   :  { %v1402_v25 = vpop.f32.mrf.mxu1 }
 0x30b   :  { %v1494_v41 = vmul.f32 1.442695, %v1493_v46  ;;  %v1403_v26 = vadd.f32 %v1402_v25, %v1332_v42 }
 0x30c   :  { %v2008_v40 = vpop.f32.mrf.mxu1 }
 0x30d   :  { %2039 = vpow2.f32 %v1494_v41  ;;  %v1413_v43 = vadd.f32 %v1698_v21, %v1403_v26 }
 0x30e   :  { %v1489_v10 = vpop.f32.mrf.mxu1 }
 0x30f   :  { %v1511_v2 = vsel %vm1510_vm7, %v1413_v43, -inf  ;;  %v1496_v12 = vsub.f32 %v1489_v10, %v1103_v11 }
 0x310   :  { %1512 = vmax.xlane.f32.xlu0 %v1511_v2  ;;  %v2015_v22 = vpop.f32.mrf.mxu1 }
 0x311   :  { %v1497_v44 = vmul.f32 %v1496_v12, %v1496_v12 }
 0x313   :  { %v1498_v7 = vmul.f32 -0.5, %v1497_v44 }
 0x31a   :  { %v2040_v37 = vpop.eup %2039 }
 0x31b   :  { %v1499_v47 = vmul.f32 %v2040_v37, %v1498_v7 }
 0x31d   :  { %v1500_v9 = vsub.f32 %v1499_v47, %v1694_v27 }
 0x31f   :  { %v1701_v19 = vadd.f32 -0.9189385, %v1500_v9 }
 0x321   :  { %2033 = vmatmul.mubr.msk.f32.vlgmr.msra.gmra.mxu1 %vm1524_vm8, %v1701_v19 }
 0x399   :  { %v1513_v48 = vpop.xlane.xlu0 %1512 }
 0x39a   :  { %v1514_v56 = vsub.f32 %v1413_v43, %v1513_v48 }
 0x39c   :  { %v1515_v45 = vmul.f32 1.442695, %v1514_v56 }
 0x39e   :  { %2041 = vpow2.f32 %v1515_v45 }
 0x3ab   :  { %v2042_v61 = vpop.eup %2041 }
 0x3ac   :  { %v1517_v29 = vsel %vm1510_vm7, %v2042_v61, 0.0 }
 0x3ad   :  { %1518 = vadd.xlane.f32.xlu0 %v1517_v29 }
 0x3e1   :  { %v1598_v14 = vpop.f32.mrf.mxu1 }
 0x3e3   :  { %v2034_v38 = vpop.f32.mrf.mxu1 }
 0x436   :  { %v1519_v20 = vpop.xlane.xlu0 %1518 }
 0x437   :  { %2043 = vlog2.f32 %v1519_v20 }
 0x444   :  { %v2044_v50 = vpop.eup %2043 }
 0x445   :  { %v1521_v51 = vmul.f32 0.6931472, %v2044_v50 }
 0x447   :  { %v1522_v35 = vadd.f32 %v1521_v51, %v1513_v48 }
 0x449   :  { %v1523_v17 = vsub.f32 %v1413_v43, %v1522_v35 }
 0x44b   :  { %v1599_v53 = vadd.f32 %v1598_v14, %v1523_v17 }
 0x44d   :  { %v1602_v54 = vsel %vm1510_vm7, %v1599_v53, -inf }
 0x44e   :  { %1603 = vmax.xlane.f32.xlu1 %v1602_v54 }
 0x4d7   :  { %v1604_v36 = vpop.xlane.xlu1 %1603 }
 0x4d8   :  { %v1605_v18 = vsub.f32 %v1599_v53, %v1604_v36 }
 0x4da   :  { %v1606_v57 = vmul.f32 1.442695, %v1605_v18 }
 0x4dc   :  { %2045 = vpow2.f32 %v1606_v57 }
 0x4e9   :  { %v2046_v58 = vpop.eup %2045 }
 0x4ea   :  { %v1608_v33 = vsel %vm1510_vm7, %v2046_v58, 0.0 }
 0x4eb   :  { %1609 = vadd.xlane.f32.xlu1 %v1608_v33 }
 0x574   :  { %v1610_v15 = vpop.xlane.xlu1 %1609 }
 0x575   :  { %2047 = vlog2.f32 %v1610_v15 }
 0x582   :  { %v2048_v60 = vpop.eup %2047 }
 0x583   :  { %v1612_v62 = vmul.f32 0.6931472, %v2048_v60 }
 0x585   :  { %v1613_v63 = vadd.f32 %v1612_v62, %v1604_v36 }
 0x587   :  { %1615 = vst.msk [vmem:[%s2730_s17] sm:$0x3] %vm1614_vm9, %v1613_v63 }

</bundles_post_ra>
